<compile_context>
chip_gen: v7x
topology: tpu7x:2x2x1
jax: 0.10.0
libtpu: 0.0.40
codegen_flags: <defaults>
</compile_context>

<pallas_src>
import math

import jax
import jax.numpy as jnp
from jax.experimental import pallas as pl
from jax.experimental.pallas import tpu as pltpu

LANE = 128       # TPU lane width: pad every feature dim to a multiple of this.
TILE_B = 256     # batch rows per grid step (tiny VMEM footprint at these sizes)


def _round_up(n, m):
    return ((n + m - 1) // m) * m


def mlp_kernel(x_ref, w1_ref, b1_ref, w2_ref, b2_ref, w3_ref, b3_ref, o_ref):
    # One batch tile per grid step; the whole (padded) network is three clean
    # 128-wide MXU matmuls (bf16 operands, f32 accumulation) + VPU ReLUs.
    x = x_ref[...]                                                   # bf16
    h1 = jnp.dot(x, w1_ref[...], preferred_element_type=jnp.float32) + b1_ref[...]
    h1 = jnp.maximum(h1, 0.0).astype(x.dtype)                        # back to bf16 for MXU
    h2 = jnp.dot(h1, w2_ref[...], preferred_element_type=jnp.float32) + b2_ref[...]
    h2 = jnp.maximum(h2, 0.0).astype(x.dtype)
    h3 = jnp.dot(h2, w3_ref[...], preferred_element_type=jnp.float32) + b3_ref[...]
    o_ref[...] = jnp.maximum(h3, 0.0)                                # lane-dense f32 store


def _pad2d(a, rows, cols, dtype):
    out = jnp.zeros((rows, cols), dtype=dtype)
    return out.at[: a.shape[0], : a.shape[1]].set(a.astype(dtype))


def network_forward(x, params):
    """x: (batch, input_size) f32; params: logical-shape f32 weights/biases."""
    w1, b1, w2, b2, w3, b3 = params
    batch, in_f = x.shape
    h1_f, h2_f, out_f = w1.shape[1], w2.shape[1], w3.shape[1]

    # Padded (lane-dense) sizes.  Zero padding keeps the math exact: padded
    # input columns hit zero weight rows, padded hidden columns get zero
    # weights + zero bias (ReLU(0) = 0), so downstream layers are unaffected.
    in_p = _round_up(in_f, LANE)
    h1_p = _round_up(h1_f, LANE)
    h2_p = _round_up(h2_f, LANE)
    out_p = _round_up(out_f, LANE)
    b_p = _round_up(max(batch, 1), TILE_B)

    x_p = jnp.zeros((b_p, in_p), dtype=jnp.bfloat16)
    x_p = x_p.at[:batch, :in_f].set(x.astype(jnp.bfloat16))

    w1_p = _pad2d(w1, in_p, h1_p, jnp.bfloat16)
    w2_p = _pad2d(w2, h1_p, h2_p, jnp.bfloat16)
    w3_p = _pad2d(w3, h2_p, out_p, jnp.bfloat16)
    b1_p = _pad2d(b1, 1, h1_p, jnp.float32)
    b2_p = _pad2d(b2, 1, h2_p, jnp.float32)
    b3_p = _pad2d(b3, 1, out_p, jnp.float32)

    grid = (b_p // TILE_B,)

    out_padded = pl.pallas_call(
        mlp_kernel,
        out_shape=jax.ShapeDtypeStruct((b_p, out_p), jnp.float32),
        grid_spec=pltpu.PrefetchScalarGridSpec(
            num_scalar_prefetch=0,
            grid=grid,
            in_specs=[
                # x: tiled over batch (auto double-buffered).
                pl.BlockSpec((TILE_B, in_p), lambda i: (i, 0)),
                # Weights / biases: same block every step -> stay VMEM-resident.
                pl.BlockSpec((in_p, h1_p), lambda i: (0, 0)),
                pl.BlockSpec((1, h1_p), lambda i: (0, 0)),
                pl.BlockSpec((h1_p, h2_p), lambda i: (0, 0)),
                pl.BlockSpec((1, h2_p), lambda i: (0, 0)),
                pl.BlockSpec((h2_p, out_p), lambda i: (0, 0)),
                pl.BlockSpec((1, out_p), lambda i: (0, 0)),
            ],
            out_specs=pl.BlockSpec((TILE_B, out_p), lambda i: (i, 0)),
        ),
        compiler_params=pltpu.CompilerParams(
            dimension_semantics=("parallel",),  # shards batch tiles across v7x's 2 TCs
        ),
    )(x_p, w1_p, b1_p, w2_p, b2_p, w3_p, b3_p)

    # Slice away batch padding and the padded output lanes.
    return out_padded[:batch, :out_f]


def xavier_uniform(key, fan_in, fan_out):
    # Matches nn.init.xavier_uniform_ on a (fan_out, fan_in) PyTorch weight;
    # we store the transpose, i.e. shape (fan_in, fan_out).
    bound = math.sqrt(6.0 / (fan_in + fan_out))
    return jax.random.uniform(
        key, (fan_in, fan_out), dtype=jnp.float32, minval=-bound, maxval=bound
    )


def linear_bias(key, fan_in, fan_out):
    # PyTorch nn.Linear default bias init: U(-1/sqrt(fan_in), 1/sqrt(fan_in)).
    bound = 1.0 / math.sqrt(fan_in)
    return jax.random.uniform(
        key, (1, fan_out), dtype=jnp.float32, minval=-bound, maxval=bound
    )


def init_params(key, input_size, h1_size, h2_size, output_size):
    k1, k2, k3, k4, k5, k6 = jax.random.split(key, 6)
    w1 = xavier_uniform(k1, input_size, h1_size)
    b1 = linear_bias(k2, input_size, h1_size)
    w2 = xavier_uniform(k3, h1_size, h2_size)
    b2 = linear_bias(k4, h1_size, h2_size)
    w3 = xavier_uniform(k5, h2_size, output_size)
    b3 = linear_bias(k6, h2_size, output_size)
    return (w1, b1, w2, b2, w3, b3)


def reference_forward(x, params):
    # Pure-JAX reference mirroring the kernel's mixed precision
    # (bf16 matmul operands, f32 accumulation, f32 bias/ReLU).
    w1, b1, w2, b2, w3, b3 = params

    def lin_relu(a, w, b):
        y = jnp.dot(
            a.astype(jnp.bfloat16),
            w.astype(jnp.bfloat16),
            preferred_element_type=jnp.float32,
        ) + b
        return jnp.maximum(y, 0.0)

    h1 = lin_relu(x, w1, b1)
    h2 = lin_relu(h1, w2, b2)
    return lin_relu(h2, w3, b3)


if __name__ == "__main__":
    # Small shapes consistent with the module: house-value regression MLP.
    # TODO(synk): the final ReLU clamps the regression output to >= 0; it
    # matches the PyTorch reference exactly but is unusual for a value head.
    batch = 8
    input_size = 13
    hidden1 = 32
    hidden2 = 32
    output_size = 1

    key = jax.random.PRNGKey(0)
    kx, kp = jax.random.split(key)
    x = jax.random.normal(kx, (batch, input_size), dtype=jnp.float32)
    params = init_params(kp, input_size, hidden1, hidden2, output_size)

    out = network_forward(x, params)
    out = jax.block_until_ready(out)

    ref = reference_forward(x, params)
    assert out.shape == (batch, output_size)
    assert jnp.allclose(out, ref, atol=1e-3, rtol=1e-3), "mismatch vs reference"

    print("KERNEL_OK")
</pallas_src>

<mosaic_0001>
module attributes {stable_mosaic.version = 11 : i64} {
  func.func @mlp_kernel(%arg0: i32, %arg1: memref<256x128xbf16, #tpu.memory_space<vmem>>, %arg2: memref<128x128xbf16, #tpu.memory_space<vmem>>, %arg3: memref<1x128xf32, #tpu.memory_space<vmem>>, %arg4: memref<128x128xbf16, #tpu.memory_space<vmem>>, %arg5: memref<1x128xf32, #tpu.memory_space<vmem>>, %arg6: memref<128x128xbf16, #tpu.memory_space<vmem>>, %arg7: memref<1x128xf32, #tpu.memory_space<vmem>>, %arg8: memref<256x128xf32, #tpu.memory_space<vmem>>) attributes {dimension_semantics = [#tpu.dimension_semantics<parallel>], iteration_bounds = array<i64: 1>, scalar_prefetch = 0 : i64, scratch_operands = 0 : i64, tpu.core_type = #tpu.core_type<tc>, window_params = [{transform_indices = @transform_0, window_bounds = array<i64: 256, 128>}, {pipeline_mode = #tpu.pipeline_mode<synchronous>, transform_indices = @transform_1, window_bounds = array<i64: 128, 128>}, {pipeline_mode = #tpu.pipeline_mode<synchronous>, transform_indices = @transform_2, window_bounds = array<i64: 1, 128>}, {pipeline_mode = #tpu.pipeline_mode<synchronous>, transform_indices = @transform_3, window_bounds = array<i64: 128, 128>}, {pipeline_mode = #tpu.pipeline_mode<synchronous>, transform_indices = @transform_4, window_bounds = array<i64: 1, 128>}, {pipeline_mode = #tpu.pipeline_mode<synchronous>, transform_indices = @transform_5, window_bounds = array<i64: 128, 128>}, {pipeline_mode = #tpu.pipeline_mode<synchronous>, transform_indices = @transform_6, window_bounds = array<i64: 1, 128>}, {transform_indices = @transform_7, window_bounds = array<i64: 256, 128>}]} {
    %c0 = arith.constant 0 : index
    %c0_0 = arith.constant 0 : index
    %0 = vector.load %arg1[%c0, %c0_0] : memref<256x128xbf16, #tpu.memory_space<vmem>>, vector<256x128xbf16>
    %c0_1 = arith.constant 0 : index
    %c0_2 = arith.constant 0 : index
    %1 = vector.load %arg2[%c0_1, %c0_2] : memref<128x128xbf16, #tpu.memory_space<vmem>>, vector<128x128xbf16>
    %cst = arith.constant dense<0.000000e+00> : vector<256x128xf32>
    %2 = tpu.matmul %0, %1, %cst {dimension_numbers = #tpu.dot_dimension_numbers<[1], [0], [0], [1], [0, 0, 1, 1], [], []>} : vector<256x128xbf16>, vector<128x128xbf16>, vector<256x128xf32> -> vector<256x128xf32>
    %c0_3 = arith.constant 0 : index
    %c0_4 = arith.constant 0 : index
    %3 = vector.load %arg3[%c0_3, %c0_4] : memref<1x128xf32, #tpu.memory_space<vmem>>, vector<1x128xf32>
    %4 = vector.broadcast %3 : vector<1x128xf32> to vector<256x128xf32>
    %5 = arith.addf %2, %4 : vector<256x128xf32>
    %cst_5 = arith.constant 0.000000e+00 : f32
    %6 = vector.broadcast %cst_5 : f32 to vector<256x128xf32>
    %7 = arith.maximumf %5, %6 : vector<256x128xf32>
    %8 = arith.truncf %7 : vector<256x128xf32> to vector<256x128xbf16>
    %c0_6 = arith.constant 0 : index
    %c0_7 = arith.constant 0 : index
    %9 = vector.load %arg4[%c0_6, %c0_7] : memref<128x128xbf16, #tpu.memory_space<vmem>>, vector<128x128xbf16>
    %cst_8 = arith.constant dense<0.000000e+00> : vector<256x128xf32>
    %10 = tpu.matmul %8, %9, %cst_8 {dimension_numbers = #tpu.dot_dimension_numbers<[1], [0], [0], [1], [0, 0, 1, 1], [], []>} : vector<256x128xbf16>, vector<128x128xbf16>, vector<256x128xf32> -> vector<256x128xf32>
    %c0_9 = arith.constant 0 : index
    %c0_10 = arith.constant 0 : index
    %11 = vector.load %arg5[%c0_9, %c0_10] : memref<1x128xf32, #tpu.memory_space<vmem>>, vector<1x128xf32>
    %12 = vector.broadcast %11 : vector<1x128xf32> to vector<256x128xf32>
    %13 = arith.addf %10, %12 : vector<256x128xf32>
    %cst_11 = arith.constant 0.000000e+00 : f32
    %14 = vector.broadcast %cst_11 : f32 to vector<256x128xf32>
    %15 = arith.maximumf %13, %14 : vector<256x128xf32>
    %16 = arith.truncf %15 : vector<256x128xf32> to vector<256x128xbf16>
    %c0_12 = arith.constant 0 : index
    %c0_13 = arith.constant 0 : index
    %17 = vector.load %arg6[%c0_12, %c0_13] : memref<128x128xbf16, #tpu.memory_space<vmem>>, vector<128x128xbf16>
    %cst_14 = arith.constant dense<0.000000e+00> : vector<256x128xf32>
    %18 = tpu.matmul %16, %17, %cst_14 {dimension_numbers = #tpu.dot_dimension_numbers<[1], [0], [0], [1], [0, 0, 1, 1], [], []>} : vector<256x128xbf16>, vector<128x128xbf16>, vector<256x128xf32> -> vector<256x128xf32>
    %c0_15 = arith.constant 0 : index
    %c0_16 = arith.constant 0 : index
    %19 = vector.load %arg7[%c0_15, %c0_16] : memref<1x128xf32, #tpu.memory_space<vmem>>, vector<1x128xf32>
    %20 = vector.broadcast %19 : vector<1x128xf32> to vector<256x128xf32>
    %21 = arith.addf %18, %20 : vector<256x128xf32>
    %cst_17 = arith.constant 0.000000e+00 : f32
    %22 = vector.broadcast %cst_17 : f32 to vector<256x128xf32>
    %23 = arith.maximumf %21, %22 : vector<256x128xf32>
    %c0_18 = arith.constant 0 : index
    %c0_19 = arith.constant 0 : index
    %24 = vector.load %arg8[%c0_18, %c0_19] : memref<256x128xf32, #tpu.memory_space<vmem>>, vector<256x128xf32>
    tpu.vector_store %arg8[%c0_18, %c0_19], %23 {strides = array<i32>} : memref<256x128xf32, #tpu.memory_space<vmem>>, vector<256x128xf32>,
    return
  }
  func.func @transform_0(%arg0: i32) -> (i32, i32) {
    %c0_i32 = arith.constant 0 : i32
    %c0_i32_0 = arith.constant 0 : i32
    return %arg0, %c0_i32 : i32, i32
  }
  func.func @transform_1(%arg0: i32) -> (i32, i32) {
    %c0_i32 = arith.constant 0 : i32
    %c0_i32_0 = arith.constant 0 : i32
    %c0_i32_1 = arith.constant 0 : i32
    return %c0_i32, %c0_i32_0 : i32, i32
  }
  func.func @transform_2(%arg0: i32) -> (i32, i32) {
    %c0_i32 = arith.constant 0 : i32
    %c0_i32_0 = arith.constant 0 : i32
    %c0_i32_1 = arith.constant 0 : i32
    return %c0_i32, %c0_i32_0 : i32, i32
  }
  func.func @transform_3(%arg0: i32) -> (i32, i32) {
    %c0_i32 = arith.constant 0 : i32
    %c0_i32_0 = arith.constant 0 : i32
    %c0_i32_1 = arith.constant 0 : i32
    return %c0_i32, %c0_i32_0 : i32, i32
  }
  func.func @transform_4(%arg0: i32) -> (i32, i32) {
    %c0_i32 = arith.constant 0 : i32
    %c0_i32_0 = arith.constant 0 : i32
    %c0_i32_1 = arith.constant 0 : i32
    return %c0_i32, %c0_i32_0 : i32, i32
  }
  func.func @transform_5(%arg0: i32) -> (i32, i32) {
    %c0_i32 = arith.constant 0 : i32
    %c0_i32_0 = arith.constant 0 : i32
    %c0_i32_1 = arith.constant 0 : i32
    return %c0_i32, %c0_i32_0 : i32, i32
  }
  func.func @transform_6(%arg0: i32) -> (i32, i32) {
    %c0_i32 = arith.constant 0 : i32
    %c0_i32_0 = arith.constant 0 : i32
    %c0_i32_1 = arith.constant 0 : i32
    return %c0_i32, %c0_i32_0 : i32, i32
  }
  func.func @transform_7(%arg0: i32) -> (i32, i32) {
    %c0_i32 = arith.constant 0 : i32
    %c0_i32_0 = arith.constant 0 : i32
    return %arg0, %c0_i32 : i32, i32
  }
}

</mosaic_0001>

<bundles_post_ra>
// kernel: tpu_custom_call.1
= control target key start
LH: loop header
LB: loop body
LE: loop exit
PB: predicated region body
PF: predicated region fallthrough
CT: control target
= control target key end

     0   :  { %12 = vsyncpa [#allocation3], 0  ;;  %s1786_s0 = inlined_call_operand.hbm [shape: bf16[256,128], index: 0, kind: input, shape index: {}]   ;;  %s1787_s1 = inlined_call_operand.hbm [shape: bf16[128,128], index: 1, kind: input, shape index: {}]   ;;  %s1788_s2 = inlined_call_operand.vmem [shape: f32[1,128], index: 2, kind: input, shape index: {}]   ;;  %s1789_s3 = inlined_call_operand.hbm [shape: bf16[128,128], index: 3, kind: input, shape index: {}]   ;;  %s1790_s4 = inlined_call_operand.vmem [shape: f32[1,128], index: 4, kind: input, shape index: {}]   ;;  %s1791_s5 = inlined_call_operand.hbm [shape: bf16[128,128], index: 5, kind: input, shape index: {}]   ;;  %s1792_s6 = inlined_call_operand.vmem [shape: f32[1,128], index: 6, kind: input, shape index: {}]   ;;  %s1793_s7 = inlined_call_operand.hbm [shape: f32[256,128], index: 7, kind: output, shape index: {}]  }
   0x1   :  { %13 = vsyncpa [#allocation6], 0 }
   0x2   :  { %14 = vsyncpa [#allocation9], 0 }
   0x3   :  { %15 = vsyncpa [#allocation4], 0  ;;  %s1528_s24 = smov [#allocation5]   ;;  %s1529_s26 = smov [#allocation2]  }
   0x4   :  { %s33_s25 = sshll.u32 %s1528_s24, 4  ;;  %s21_s27 = sshll.u32 %s1529_s26, 4  ;;  %s34_s25 = int_to_ptr.vmem [resolvable:$true] %s33_s25  ;;  %s1577_s27 = int_to_ptr.vmem [resolvable:$true] %s21_s27 }
   0x5   :  { %s1410_s30 = scalar_lea.hbm %s1787_s1, 1024 }
   0x6   :  { %p1411_p0 = scmp.ne.s32.totalorder %s1787_s1, %s1410_s30  ;;  %p1414_p1 = scmp.lt.u32.totalorder %s1410_s30, %s1787_s1 }
   0x8   :  { %p1416_p2 = pnand %p1414_p1, %p1411_p0 }
   0xa   :  { %1419 = shalt.err (!%p1416_p2)
}
   0xb   :  { %s1420_s12 = scalar_lea.vmem %s34_s25, 1024  ;;  %p1425_p4 = scmp.lt.s32.totalorder %s34_s25, %s34_s25 }
   0xc   :  { %p1421_p3 = scmp.ne.s32.totalorder %s34_s25, %s1420_s12  ;;  %p1426_p5 = scmp.lt.s32.totalorder %s1420_s12, %s1420_s12 }
   0xe   :  { %p1427_p6 = por %p1426_p5, %p1425_p4 }
  0x10   :  { %p1428_p7 = pnand %p1427_p6, %p1421_p3 }
  0x12   :  { %1431 = shalt.err (!%p1428_p7)
}
  0x13   :  { %s1530_s13 = smov 64   ;;  %s1531_s14 = smov 4  }
  0x14   :  { %39 = dma.hbm_to_vmem [thread:$0]  %s1787_s1, 1024, %s34_s25, [#allocation6], %s1530_s13, %s1530_s13, %s1531_s14  }
  0x15   :  { %s1432_s19 = scalar_lea.hbm %s1786_s0, 2048 }
  0x16   :  { %p1433_p8 = scmp.ne.s32.totalorder %s1786_s0, %s1432_s19  ;;  %p1436_p9 = scmp.lt.u32.totalorder %s1432_s19, %s1786_s0 }
  0x18   :  { %p1438_p10 = pnand %p1436_p9, %p1433_p8 }
  0x1a   :  { %1441 = shalt.err (!%p1438_p10)
}
  0x1b   :  { %s1442_s24 = scalar_lea.vmem %s1577_s27, 2048  ;;  %p1447_p12 = scmp.lt.s32.totalorder %s1577_s27, %s1577_s27 }
  0x1c   :  { %p1443_p11 = scmp.ne.s32.totalorder %s1577_s27, %s1442_s24  ;;  %p1448_p13 = scmp.lt.s32.totalorder %s1442_s24, %s1442_s24 }
  0x1e   :  { %p1449_p0 = por %p1448_p13, %p1447_p12 }
  0x20   :  { %p1450_p1 = pnand %p1449_p0, %p1443_p11 }
  0x22   :  { %1453 = shalt.err (!%p1450_p1)
}
  0x23   :  { %27 = dma.hbm_to_vmem [thread:$0]  %s1786_s0, 2048, %s1577_s27, [#allocation3], %s1530_s13, %s1530_s13, %s1531_s14  }
  0x24   :  { %s1532_s26 = smov [#allocation7]   ;;  %s1533_s29 = smov [#allocation8]  }
  0x25   :  { %s47_s28 = sshll.u32 %s1532_s26, 4  ;;  %s61_s30 = sshll.u32 %s1533_s29, 4  ;;  %s48_s28 = int_to_ptr.vmem [resolvable:$true] %s47_s28  ;;  %s1614_s30 = int_to_ptr.vmem [resolvable:$true] %s61_s30 }
  0x26   :  { %s1454_s10 = scalar_lea.hbm %s1789_s3, 1024 }
  0x27   :  { %p1455_p2 = scmp.ne.s32.totalorder %s1789_s3, %s1454_s10  ;;  %p1458_p3 = scmp.lt.u32.totalorder %s1454_s10, %s1789_s3 }
  0x29   :  { %p1460_p4 = pnand %p1458_p3, %p1455_p2 }
  0x2b   :  { %1463 = shalt.err (!%p1460_p4)
}
  0x2c   :  { %s1464_s0 = scalar_lea.vmem %s48_s28, 1024  ;;  %p1469_p6 = scmp.lt.s32.totalorder %s48_s28, %s48_s28 }
  0x2d   :  { %p1465_p5 = scmp.ne.s32.totalorder %s48_s28, %s1464_s0  ;;  %p1470_p7 = scmp.lt.s32.totalorder %s1464_s0, %s1464_s0 }
  0x2f   :  { %p1471_p8 = por %p1470_p7, %p1469_p6 }
  0x31   :  { %p1472_p9 = pnand %p1471_p8, %p1465_p5 }
  0x33   :  { %1475 = shalt.err (!%p1472_p9)
}
  0x34   :  { %53 = dma.hbm_to_vmem [thread:$0]  %s1789_s3, 1024, %s48_s28, [#allocation6], %s1530_s13, %s1530_s13, %s1531_s14  }
  0x35   :  { %s1476_s20 = scalar_lea.hbm %s1791_s5, 1024 }
  0x36   :  { %p1477_p10 = scmp.ne.s32.totalorder %s1791_s5, %s1476_s20  ;;  %p1480_p11 = scmp.lt.u32.totalorder %s1476_s20, %s1791_s5 }
  0x38   :  { %p1482_p12 = pnand %p1480_p11, %p1477_p10 }
  0x3a   :  { %1485 = shalt.err (!%p1482_p12)
}
  0x3b   :  { %s1486_s1 = scalar_lea.vmem %s1614_s30, 1024  ;;  %p1491_p0 = scmp.lt.s32.totalorder %s1614_s30, %s1614_s30 }
  0x3c   :  { %p1487_p13 = scmp.ne.s32.totalorder %s1614_s30, %s1486_s1  ;;  %p1492_p1 = scmp.lt.s32.totalorder %s1486_s1, %s1486_s1 }
  0x3e   :  { %p1493_p2 = por %p1492_p1, %p1491_p0 }
  0x40   :  { %p1494_p3 = pnand %p1493_p2, %p1487_p13 }
  0x42   :  { %1497 = shalt.err (!%p1494_p3)
}
  0x43   :  { %67 = dma.hbm_to_vmem [thread:$0]  %s1791_s5, 1024, %s1614_s30, [#allocation9], %s1530_s13, %s1530_s13, %s1531_s14  }
  0x44   :  { %1520 = dma.done.wait [#allocation3], 2048  }
  0x45   :  { %1521 = vsyncadd [#allocation3], 4294965248 }
  0x46   :  { %1522 = dma.done.wait [#allocation6], 2048  }
  0x47   :  { %1523 = vsyncadd [#allocation6], 4294965248 }
  0x48   :  { %1524 = dma.done.wait [#allocation9], 1024  }
  0x49   :  { %1525 = vsyncadd [#allocation9], 4294966272  ;;  %v1370_v0 = vld [vmem:[#allocation5] sm:$0xff]   ;;  %v1371_v1 = vld [vmem:[#allocation5 + $0x8] sm:$0xff]  }
  0x4a   :  { %1201 = vmatprep.subr.bf16.mxu0 %v1370_v0  ;;  %1345 = vmatprep.subr.bf16.mxu1 %v1370_v0  ;;  %v1372_v2 = vld [vmem:[#allocation5 + $0x10] sm:$0xff]   ;;  %v1373_v3 = vld [vmem:[#allocation5 + $0x18] sm:$0xff]   ;;  %v1378_v4 = vld [vmem:[#allocation2] sm:$0xff]  }
  0x4b   :  { %1202 = vmatpush3.bf16.msra.mxu0 %v1370_v0  ;;  %1353 = vmatpush3.bf16.msra.mxu1 %v1370_v0  ;;  %v1374_v5 = vld [vmem:[#allocation5 + $0x20] sm:$0xff]   ;;  %v1375_v6 = vld [vmem:[#allocation5 + $0x28] sm:$0xff]   ;;  %v1376_v8 = vld [vmem:[#allocation5 + $0x30] sm:$0xff]  }
  0x4c   :  { %1203 = vmatprep.subr.bf16.mxu0 %v1371_v1  ;;  %1346 = vmatprep.subr.bf16.mxu1 %v1371_v1  ;;  %v1386_v7 = vld [vmem:[#allocation2 + $0x40] sm:$0xff]   ;;  %v1377_v9 = vld [vmem:[#allocation5 + $0x38] sm:$0xff]   ;;  %v1379_v10 = vld [vmem:[#allocation2 + $0x8] sm:$0xff]  }
  0x4d   :  { %1217 = vmatprep.mubr.bf16.mxu0 %v1378_v4  ;;  %1233 = vmatprep.mubr.bf16.mxu1 %v1386_v7  ;;  %v1387_v11 = vld [vmem:[#allocation2 + $0x48] sm:$0xff]   ;;  %v1394_v12 = vld [vmem:[#allocation7] sm:$0xff]   ;;  %v1380_v13 = vld [vmem:[#allocation2 + $0x10] sm:$0xff]  }
  0x4e   :  { %v1388_v14 = vld [vmem:[#allocation2 + $0x50] sm:$0xff]   ;;  %v1395_v15 = vld [vmem:[#allocation7 + $0x8] sm:$0xff]   ;;  %v1381_v17 = vld [vmem:[#allocation2 + $0x18] sm:$0xff]  }
  0x4f   :  { %1204 = vmatpush3.bf16.msra.mxu0 %v1371_v1  ;;  %1354 = vmatpush3.bf16.msra.mxu1 %v1371_v1  ;;  %v1396_v16 = vld [vmem:[#allocation7 + $0x10] sm:$0xff]   ;;  %v1389_v18 = vld [vmem:[#allocation2 + $0x58] sm:$0xff]   ;;  %v1382_v19 = vld [vmem:[#allocation2 + $0x20] sm:$0xff]  }
  0x50   :  { %1205 = vmatprep.subr.bf16.mxu0 %v1372_v2  ;;  %1347 = vmatprep.subr.bf16.mxu1 %v1372_v2  ;;  %v1390_v20 = vld [vmem:[#allocation2 + $0x60] sm:$0xff]   ;;  %v1397_v21 = vld [vmem:[#allocation7 + $0x18] sm:$0xff]   ;;  %v1383_v23 = vld [vmem:[#allocation2 + $0x28] sm:$0xff]  }
  0x51   :  { %v1398_v22 = vld [vmem:[#allocation7 + $0x20] sm:$0xff]   ;;  %v1391_v24 = vld [vmem:[#allocation2 + $0x68] sm:$0xff]   ;;  %v1384_v25 = vld [vmem:[#allocation2 + $0x30] sm:$0xff]  }
  0x52   :  { %v1392_v26 = vld [vmem:[#allocation2 + $0x70] sm:$0xff]   ;;  %v1399_v27 = vld [vmem:[#allocation7 + $0x28] sm:$0xff]   ;;  %v1385_v28 = vld [vmem:[#allocation2 + $0x38] sm:$0xff]  }
  0x53   :  { %1206 = vmatpush3.bf16.msra.mxu0 %v1372_v2  ;;  %1355 = vmatpush3.bf16.msra.mxu1 %v1372_v2  ;;  %v1393_v29 = vld [vmem:[#allocation2 + $0x78] sm:$0xff]   ;;  %v1400_v30 = vld [vmem:[#allocation7 + $0x30] sm:$0xff]   ;;  %v1402_v32 = vld [vmem:[#allocation8] sm:$0xff]  }
  0x54   :  { %1207 = vmatprep.subr.bf16.mxu0 %v1373_v3  ;;  %1348 = vmatprep.subr.bf16.mxu1 %v1373_v3  ;;  %v1401_v31 = vld [vmem:[#allocation7 + $0x38] sm:$0xff]   ;;  %v1403_v33 = vld [vmem:[#allocation8 + $0x8] sm:$0xff]   ;;  %v1404_v34 = vld [vmem:[#allocation8 + $0x10] sm:$0xff]  }
  0x55   :  { %v1405_v35 = vld [vmem:[#allocation8 + $0x18] sm:$0xff]   ;;  %v1406_v36 = vld [vmem:[#allocation8 + $0x20] sm:$0xff]   ;;  %v1407_v37 = vld [vmem:[#allocation8 + $0x28] sm:$0xff]  }
  0x56   :  { %v1654_v38 = vld [vmem:[%s1788_s2] ss:$0 sm:$0xff] }
  0x57   :  { %1208 = vmatpush3.bf16.msra.mxu0 %v1373_v3  ;;  %1356 = vmatpush3.bf16.msra.mxu1 %v1373_v3 }
  0x58   :  { %1209 = vmatprep.subr.bf16.mxu0 %v1374_v5  ;;  %1349 = vmatprep.subr.bf16.mxu1 %v1374_v5 }
  0x5b   :  { %1210 = vmatpush3.bf16.msra.mxu0 %v1374_v5  ;;  %1357 = vmatpush3.bf16.msra.mxu1 %v1374_v5 }
  0x5c   :  { %1211 = vmatprep.subr.bf16.mxu0 %v1375_v6  ;;  %1350 = vmatprep.subr.bf16.mxu1 %v1375_v6 }
  0x5f   :  { %1212 = vmatpush3.bf16.msra.mxu0 %v1375_v6  ;;  %1358 = vmatpush3.bf16.msra.mxu1 %v1375_v6 }
  0x60   :  { %1213 = vmatprep.subr.bf16.mxu0 %v1376_v8  ;;  %1351 = vmatprep.subr.bf16.mxu1 %v1376_v8 }
  0x63   :  { %1214 = vmatpush3.bf16.msra.mxu0 %v1376_v8  ;;  %1359 = vmatpush3.bf16.msra.mxu1 %v1376_v8 }
  0x64   :  { %1215 = vmatprep.subr.bf16.mxu0 %v1377_v9  ;;  %1352 = vmatprep.subr.bf16.mxu1 %v1377_v9 }
  0x67   :  { %1216 = vmatpush3.bf16.msra.mxu0 %v1377_v9  ;;  %1360 = vmatpush3.bf16.msra.mxu1 %v1377_v9 }
  0x68   :  { %1249 = vmatprep.subr.bf16.mxu1 %v1394_v12  ;;  %1297 = vmatprep.subr.bf16.mxu0 %v1402_v32 }
  0x6a   :  { %1218 = vmatmul.mubr.bf16.vlgmr.msra.gmra.mrb[0].mxu0 %v1379_v10  ;;  %1234 = vmatmul.mubr.bf16.vlgmr.msra.gmra.mrb[0].mxu1 %v1387_v11 }
  0x6b   :  { %1221 = vmatprep.mubr.bf16.mxu0 %v1380_v13  ;;  %1237 = vmatprep.mubr.bf16.mxu1 %v1388_v14 }
  0x6c   :  { %1250 = vmatpush3.bf16.msra.mxu1 %v1394_v12  ;;  %1298 = vmatpush3.bf16.msra.mxu0 %v1402_v32 }
  0x6d   :  { %1251 = vmatprep.subr.bf16.mxu1 %v1395_v15  ;;  %1299 = vmatprep.subr.bf16.mxu0 %v1403_v33 }
  0x70   :  { %1252 = vmatpush3.bf16.msra.mxu1 %v1395_v15  ;;  %1300 = vmatpush3.bf16.msra.mxu0 %v1403_v33 }
  0x71   :  { %1253 = vmatprep.subr.bf16.mxu1 %v1396_v16  ;;  %1301 = vmatprep.subr.bf16.mxu0 %v1404_v34 }
  0x72   :  { %1222 = vmatmul.mubr.bf16.gmra.mrb[4].mxu0 %v1381_v17  ;;  %1238 = vmatmul.mubr.bf16.gmra.mrb[4].mxu1 %v1389_v18 }
  0x73   :  { %1225 = vmatprep.mubr.bf16.mxu0 %v1382_v19  ;;  %1241 = vmatprep.mubr.bf16.mxu1 %v1390_v20 }
  0x74   :  { %1254 = vmatpush3.bf16.msra.mxu1 %v1396_v16  ;;  %1302 = vmatpush3.bf16.msra.mxu0 %v1404_v34 }
  0x75   :  { %1255 = vmatprep.subr.bf16.mxu1 %v1397_v21  ;;  %1303 = vmatprep.subr.bf16.mxu0 %v1405_v35 }
  0x78   :  { %1256 = vmatpush3.bf16.msra.mxu1 %v1397_v21  ;;  %1304 = vmatpush3.bf16.msra.mxu0 %v1405_v35 }
  0x79   :  { %1257 = vmatprep.subr.bf16.mxu1 %v1398_v22  ;;  %1305 = vmatprep.subr.bf16.mxu0 %v1406_v36 }
  0x7a   :  { %1226 = vmatmul.mubr.bf16.gmra.mrb[8].mxu0 %v1383_v23  ;;  %1242 = vmatmul.mubr.bf16.gmra.mrb[8].mxu1 %v1391_v24 }
  0x7b   :  { %1229 = vmatprep.mubr.bf16.mxu0 %v1384_v25  ;;  %1245 = vmatprep.mubr.bf16.mxu1 %v1392_v26 }
  0x7c   :  { %1258 = vmatpush3.bf16.msra.mxu1 %v1398_v22  ;;  %1306 = vmatpush3.bf16.msra.mxu0 %v1406_v36 }
  0x7d   :  { %1259 = vmatprep.subr.bf16.mxu1 %v1399_v27  ;;  %1307 = vmatprep.subr.bf16.mxu0 %v1407_v37 }
  0x80   :  { %1260 = vmatpush3.bf16.msra.mxu1 %v1399_v27  ;;  %1308 = vmatpush3.bf16.msra.mxu0 %v1407_v37 }
  0x81   :  { %1261 = vmatprep.subr.bf16.mxu1 %v1400_v30 }
  0x82   :  { %1230 = vmatmul.mubr.bf16.gmra.mrb[12].mxu0 %v1385_v28  ;;  %1246 = vmatmul.mubr.bf16.gmra.mrb[12].mxu1 %v1393_v29 }
  0x84   :  { %1262 = vmatpush3.bf16.msra.mxu1 %v1400_v30 }
  0x85   :  { %1263 = vmatprep.subr.bf16.mxu1 %v1401_v31 }
  0x88   :  { %1264 = vmatpush3.bf16.msra.mxu1 %v1401_v31 }
 0x13d   :  { %v1219_v39 = vpop.f32.mrb[0].mxu0  ;;  %v1235_v40 = vpop.f32.mrb[0].mxu1 }
 0x13e   :  { %v325_v41 = vadd.f32 %v1219_v39, %v1654_v38  ;;  %v316_v42 = vpop.f32.mrb[1].mxu0  ;;  %v389_v43 = vadd.f32 %v1235_v40, %v1654_v38  ;;  %v380_v44 = vpop.f32.mrb[1].mxu1 }
 0x13f   :  { %v317_v45 = vadd.f32 %v1654_v38, %v316_v42  ;;  %v1220_v46 = vpop.f32.mrb[2].mxu0  ;;  %v381_v47 = vadd.f32 %v1654_v38, %v380_v44  ;;  %v1236_v48 = vpop.f32.mrb[2].mxu1 }
 0x140   :  { %v328_v49 = vadd.f32 %v1220_v46, %v1654_v38  ;;  %v319_v50 = vpop.f32.mrb[3].mxu0  ;;  %v461_v51 = vmax.f32 %v389_v43, 0.0  ;;  %v392_v52 = vadd.f32 %v1236_v48, %v1654_v38  ;;  %v383_v53 = vpop.f32.mrb[3].mxu1  ;;  %v445_v57 = vmax.f32 %v325_v41, 0.0 }
 0x141   :  { %v320_v54 = vadd.f32 %v1654_v38, %v319_v50  ;;  %v459_v55 = vmax.f32 %v381_v47, 0.0  ;;  %v384_v56 = vadd.f32 %v1654_v38, %v383_v53  ;;  %v443_v60 = vmax.f32 %v317_v45, 0.0 }
 0x142   :  { %v446_v58 = vmax.f32 %v328_v49, 0.0  ;;  %v462_v59 = vmax.f32 %v392_v52, 0.0 }
 0x143   :  { %v444_v61 = vmax.f32 %v320_v54, 0.0  ;;  %v460_v62 = vmax.f32 %v384_v56, 0.0 }
 0x144   :  { %v476_v63 = vpack.c.bf16 %v446_v58, %v445_v57  ;;  %v1664_v0 = vpack.c.bf16 %v462_v59, %v461_v51 }
 0x145   :  { %v475_v1 = vpack.c.bf16 %v444_v61, %v443_v60  ;;  %v1223_v2 = vpop.f32.mrb[4].mxu0  ;;  %v1666_v3 = vpack.c.bf16 %v460_v62, %v459_v55  ;;  %v1239_v4 = vpop.f32.mrb[4].mxu1 }
 0x146   :  { %v341_v5 = vadd.f32 %v1223_v2, %v1654_v38  ;;  %v332_v6 = vpop.f32.mrb[5].mxu0  ;;  %v405_v7 = vadd.f32 %v1239_v4, %v1654_v38  ;;  %v396_v8 = vpop.f32.mrb[5].mxu1 }
 0x147   :  { %v333_v9 = vadd.f32 %v1654_v38, %v332_v6  ;;  %v1224_v10 = vpop.f32.mrb[6].mxu0  ;;  %1265 = vmatprep.mubr.bf16.mxu1 %v475_v1  ;;  %v397_v11 = vadd.f32 %v1654_v38, %v396_v8  ;;  %v1240_v12 = vpop.f32.mrb[6].mxu1 }
 0x148   :  { %v344_v13 = vadd.f32 %v1224_v10, %v1654_v38  ;;  %v335_v14 = vpop.f32.mrb[7].mxu0  ;;  %1266 = vmatmul.mubr.bf16.vlgmr.msra.gmra.mrb[16].mxu1 %v476_v63  ;;  %v465_v15 = vmax.f32 %v405_v7, 0.0  ;;  %v408_v16 = vadd.f32 %v1240_v12, %v1654_v38  ;;  %v399_v17 = vpop.f32.mrb[7].mxu1  ;;  %v449_v21 = vmax.f32 %v341_v5, 0.0 }
 0x149   :  { %v336_v18 = vadd.f32 %v1654_v38, %v335_v14  ;;  %v463_v19 = vmax.f32 %v397_v11, 0.0  ;;  %v400_v20 = vadd.f32 %v1654_v38, %v399_v17  ;;  %v447_v24 = vmax.f32 %v333_v9, 0.0 }
 0x14a   :  { %v450_v22 = vmax.f32 %v344_v13, 0.0  ;;  %v466_v23 = vmax.f32 %v408_v16, 0.0 }
 0x14b   :  { %v448_v25 = vmax.f32 %v336_v18, 0.0  ;;  %v464_v26 = vmax.f32 %v400_v20, 0.0 }
 0x14c   :  { %v478_v27 = vpack.c.bf16 %v450_v22, %v449_v21  ;;  %v1676_v28 = vpack.c.bf16 %v466_v23, %v465_v15 }
 0x14d   :  { %v477_v29 = vpack.c.bf16 %v448_v25, %v447_v24  ;;  %v1227_v30 = vpop.f32.mrb[8].mxu0  ;;  %v1678_v31 = vpack.c.bf16 %v464_v26, %v463_v19  ;;  %v1243_v32 = vpop.f32.mrb[8].mxu1  ;;  %v1409_v26 = vld [vmem:[#allocation8 + $0x38] sm:$0xff]  }
 0x14e   :  { %v357_v33 = vadd.f32 %v1227_v30, %v1654_v38  ;;  %v348_v34 = vpop.f32.mrb[9].mxu0  ;;  %v421_v35 = vadd.f32 %v1243_v32, %v1654_v38  ;;  %v412_v36 = vpop.f32.mrb[9].mxu1 }
 0x14f   :  { %v349_v37 = vadd.f32 %v1654_v38, %v348_v34  ;;  %v1228_v39 = vpop.f32.mrb[10].mxu0  ;;  %1269 = vmatprep.mubr.bf16.mxu1 %v477_v29  ;;  %v413_v40 = vadd.f32 %v1654_v38, %v412_v36  ;;  %v1244_v41 = vpop.f32.mrb[10].mxu1 }
 0x150   :  { %v360_v42 = vadd.f32 %v1228_v39, %v1654_v38  ;;  %v351_v43 = vpop.f32.mrb[11].mxu0  ;;  %1270 = vmatmul.mubr.bf16.gmra.mrb[20].mxu1 %v478_v27  ;;  %v469_v44 = vmax.f32 %v421_v35, 0.0  ;;  %v424_v45 = vadd.f32 %v1244_v41, %v1654_v38  ;;  %v415_v46 = vpop.f32.mrb[11].mxu1  ;;  %v453_v50 = vmax.f32 %v357_v33, 0.0 }
 0x151   :  { %v352_v47 = vadd.f32 %v1654_v38, %v351_v43  ;;  %v467_v48 = vmax.f32 %v413_v40, 0.0  ;;  %v416_v49 = vadd.f32 %v1654_v38, %v415_v46  ;;  %v451_v53 = vmax.f32 %v349_v37, 0.0 }
 0x152   :  { %v454_v51 = vmax.f32 %v360_v42, 0.0  ;;  %v470_v52 = vmax.f32 %v424_v45, 0.0 }
 0x153   :  { %v452_v54 = vmax.f32 %v352_v47, 0.0  ;;  %v468_v55 = vmax.f32 %v416_v49, 0.0 }
 0x154   :  { %v480_v56 = vpack.c.bf16 %v454_v51, %v453_v50  ;;  %v488_v57 = vpack.c.bf16 %v470_v52, %v469_v44 }
 0x155   :  { %v479_v58 = vpack.c.bf16 %v452_v54, %v451_v53  ;;  %v1231_v59 = vpop.f32.mrb[12].mxu0  ;;  %v487_v60 = vpack.c.bf16 %v468_v55, %v467_v48  ;;  %v1247_v61 = vpop.f32.mrb[12].mxu1 }
 0x156   :  { %v373_v62 = vadd.f32 %v1231_v59, %v1654_v38  ;;  %v364_v63 = vpop.f32.mrb[13].mxu0  ;;  %v437_v1 = vadd.f32 %v1247_v61, %v1654_v38  ;;  %v428_v2 = vpop.f32.mrb[13].mxu1 }
 0x157   :  { %v365_v4 = vadd.f32 %v1654_v38, %v364_v63  ;;  %v1232_v5 = vpop.f32.mrb[14].mxu0  ;;  %1273 = vmatprep.mubr.bf16.mxu1 %v479_v58  ;;  %v429_v6 = vadd.f32 %v1654_v38, %v428_v2  ;;  %v1248_v7 = vpop.f32.mrb[14].mxu1 }
 0x158   :  { %v376_v8 = vadd.f32 %v1232_v5, %v1654_v38  ;;  %v367_v9 = vpop.f32.mrb[15].mxu0  ;;  %1274 = vmatmul.mubr.bf16.gmra.mrb[24].mxu1 %v480_v56  ;;  %v473_v10 = vmax.f32 %v437_v1, 0.0  ;;  %v440_v11 = vadd.f32 %v1248_v7, %v1654_v38  ;;  %v431_v12 = vpop.f32.mrb[15].mxu1  ;;  %v457_v16 = vmax.f32 %v373_v62, 0.0 }
 0x159   :  { %v368_v13 = vadd.f32 %v1654_v38, %v367_v9  ;;  %v471_v14 = vmax.f32 %v429_v6, 0.0  ;;  %v432_v15 = vadd.f32 %v1654_v38, %v431_v12  ;;  %v455_v19 = vmax.f32 %v365_v4, 0.0  ;;  %v1408_v38 = vld [vmem:[#allocation8 + $0x30] sm:$0xff]  }
 0x15a   :  { %v458_v17 = vmax.f32 %v376_v8, 0.0  ;;  %v474_v18 = vmax.f32 %v440_v11, 0.0  ;;  %1309 = vmatprep.subr.bf16.mxu0 %v1408_v38 }
 0x15b   :  { %v456_v20 = vmax.f32 %v368_v13, 0.0  ;;  %v472_v21 = vmax.f32 %v432_v15, 0.0  ;;  %1310 = vmatpush3.bf16.msra.mxu0 %v1408_v38 }
 0x15c   :  { %v482_v22 = vpack.c.bf16 %v458_v17, %v457_v16  ;;  %v490_v23 = vpack.c.bf16 %v474_v18, %v473_v10  ;;  %1311 = vmatprep.subr.bf16.mxu0 %v1409_v26 }
 0x15d   :  { %v481_v24 = vpack.c.bf16 %v456_v20, %v455_v19  ;;  %v489_v25 = vpack.c.bf16 %v472_v21, %v471_v14 }
 0x15f   :  { %1277 = vmatprep.mubr.bf16.mxu1 %v481_v24  ;;  %1312 = vmatpush3.bf16.msra.mxu0 %v1409_v26 }
 0x160   :  { %1278 = vmatmul.mubr.bf16.gmra.mrb[28].mxu1 %v482_v22 }
 0x161   :  { %1281 = vmatprep.mubr.bf16.mxu1 %v1666_v3  ;;  %v1703_v3 = vld [vmem:[%s1790_s4] ss:$0 sm:$0xff] }
 0x168   :  { %1282 = vmatmul.mubr.bf16.gmra.mrb[32].mxu1 %v1664_v0 }
 0x169   :  { %1285 = vmatprep.mubr.bf16.mxu1 %v1678_v31 }
 0x170   :  { %1286 = vmatmul.mubr.bf16.gmra.mrb[36].mxu1 %v1676_v28 }
 0x171   :  { %1289 = vmatprep.mubr.bf16.mxu1 %v487_v60 }
 0x178   :  { %1290 = vmatmul.mubr.bf16.gmra.mrb[40].mxu1 %v488_v57 }
 0x179   :  { %1293 = vmatprep.mubr.bf16.mxu1 %v489_v25 }
 0x180   :  { %1294 = vmatmul.mubr.bf16.gmra.mrb[44].mxu1 %v490_v23 }
 0x21b   :  { %v1267_v0 = vpop.f32.mrb[16].mxu1 }
 0x21c   :  { %v605_v27 = vadd.f32 %v1267_v0, %v1703_v3  ;;  %v596_v29 = vpop.f32.mrb[17].mxu1 }
 0x21d   :  { %v597_v28 = vadd.f32 %v1703_v3, %v596_v29  ;;  %v1268_v30 = vpop.f32.mrb[18].mxu1 }
 0x21e   :  { %v608_v31 = vadd.f32 %v1268_v30, %v1703_v3  ;;  %v599_v32 = vpop.f32.mrb[19].mxu1  ;;  %v725_v34 = vmax.f32 %v605_v27, 0.0 }
 0x21f   :  { %v600_v33 = vadd.f32 %v1703_v3, %v599_v32  ;;  %v723_v36 = vmax.f32 %v597_v28, 0.0 }
 0x220   :  { %v726_v35 = vmax.f32 %v608_v31, 0.0 }
 0x221   :  { %v724_v37 = vmax.f32 %v600_v33, 0.0 }
 0x222   :  { %v756_v39 = vpack.c.bf16 %v726_v35, %v725_v34 }
 0x223   :  { %v755_v40 = vpack.c.bf16 %v724_v37, %v723_v36  ;;  %v1271_v41 = vpop.f32.mrb[20].mxu1 }
 0x224   :  { %v621_v42 = vadd.f32 %v1271_v41, %v1703_v3  ;;  %v612_v43 = vpop.f32.mrb[21].mxu1 }
 0x225   :  { %v613_v44 = vadd.f32 %v1703_v3, %v612_v43  ;;  %v1272_v45 = vpop.f32.mrb[22].mxu1  ;;  %1313 = vmatprep.mubr.bf16.mxu0 %v755_v40 }
 0x226   :  { %v624_v46 = vadd.f32 %v1272_v45, %v1703_v3  ;;  %v615_v47 = vpop.f32.mrb[23].mxu1  ;;  %1314 = vmatmul.mubr.bf16.vlgmr.msra.gmra.mrb[16].mxu0 %v756_v39  ;;  %v729_v49 = vmax.f32 %v621_v42, 0.0 }
 0x227   :  { %v616_v48 = vadd.f32 %v1703_v3, %v615_v47  ;;  %v727_v51 = vmax.f32 %v613_v44, 0.0 }
 0x228   :  { %v730_v50 = vmax.f32 %v624_v46, 0.0 }
 0x229   :  { %v728_v52 = vmax.f32 %v616_v48, 0.0 }
 0x22a   :  { %v758_v53 = vpack.c.bf16 %v730_v50, %v729_v49 }
 0x22b   :  { %v757_v54 = vpack.c.bf16 %v728_v52, %v727_v51  ;;  %v1275_v55 = vpop.f32.mrb[24].mxu1 }
 0x22c   :  { %v637_v56 = vadd.f32 %v1275_v55, %v1703_v3  ;;  %v628_v57 = vpop.f32.mrb[25].mxu1 }
 0x22d   :  { %v629_v58 = vadd.f32 %v1703_v3, %v628_v57  ;;  %v1276_v59 = vpop.f32.mrb[26].mxu1  ;;  %1317 = vmatprep.mubr.bf16.mxu0 %v757_v54 }
 0x22e   :  { %v640_v60 = vadd.f32 %v1276_v59, %v1703_v3  ;;  %v631_v61 = vpop.f32.mrb[27].mxu1  ;;  %1318 = vmatmul.mubr.bf16.gmra.mrb[20].mxu0 %v758_v53  ;;  %v733_v63 = vmax.f32 %v637_v56, 0.0 }
 0x22f   :  { %v632_v62 = vadd.f32 %v1703_v3, %v631_v61  ;;  %v731_v2 = vmax.f32 %v629_v58, 0.0 }
 0x230   :  { %v734_v1 = vmax.f32 %v640_v60, 0.0 }
 0x231   :  { %v732_v4 = vmax.f32 %v632_v62, 0.0 }
 0x232   :  { %v760_v5 = vpack.c.bf16 %v734_v1, %v733_v63 }
 0x233   :  { %v759_v6 = vpack.c.bf16 %v732_v4, %v731_v2  ;;  %v1279_v7 = vpop.f32.mrb[28].mxu1 }
 0x234   :  { %v653_v8 = vadd.f32 %v1279_v7, %v1703_v3  ;;  %v644_v9 = vpop.f32.mrb[29].mxu1 }
 0x235   :  { %v645_v10 = vadd.f32 %v1703_v3, %v644_v9  ;;  %v1280_v11 = vpop.f32.mrb[30].mxu1  ;;  %1321 = vmatprep.mubr.bf16.mxu0 %v759_v6 }
 0x236   :  { %v656_v12 = vadd.f32 %v1280_v11, %v1703_v3  ;;  %v647_v13 = vpop.f32.mrb[31].mxu1  ;;  %1322 = vmatmul.mubr.bf16.gmra.mrb[24].mxu0 %v760_v5  ;;  %v737_v15 = vmax.f32 %v653_v8, 0.0 }
 0x237   :  { %v648_v14 = vadd.f32 %v1703_v3, %v647_v13  ;;  %v735_v17 = vmax.f32 %v645_v10, 0.0 }
 0x238   :  { %v738_v16 = vmax.f32 %v656_v12, 0.0 }
 0x239   :  { %v736_v18 = vmax.f32 %v648_v14, 0.0  ;;  %v1740_v14 = vld [vmem:[%s1792_s6] ss:$0 sm:$0xff]  ;;  %s1534_s6 = smov [#allocation10]  }
 0x23a   :  { %v762_v19 = vpack.c.bf16 %v738_v16, %v737_v15  ;;  %s1072_s28 = sshll.u32 %s1534_s6, 4  ;;  %s1073_s28 = int_to_ptr.vmem [resolvable:$true] %s1072_s28 }
 0x23b   :  { %v761_v20 = vpack.c.bf16 %v736_v18, %v735_v17  ;;  %v1283_v21 = vpop.f32.mrb[32].mxu1  ;;  %s1498_s29 = scalar_lea.vmem %s1073_s28, 4096  ;;  %p1503_p5 = scmp.lt.s32.totalorder %s1073_s28, %s1073_s28 }
 0x23c   :  { %v669_v22 = vadd.f32 %v1283_v21, %v1703_v3  ;;  %v660_v23 = vpop.f32.mrb[33].mxu1  ;;  %p1499_p4 = scmp.ne.s32.totalorder %s1073_s28, %s1498_s29  ;;  %p1504_p6 = scmp.lt.s32.totalorder %s1498_s29, %s1498_s29 }
 0x23d   :  { %v661_v24 = vadd.f32 %v1703_v3, %v660_v23  ;;  %v1284_v25 = vpop.f32.mrb[34].mxu1  ;;  %1325 = vmatprep.mubr.bf16.mxu0 %v761_v20 }
 0x23e   :  { %v672_v38 = vadd.f32 %v1284_v25, %v1703_v3  ;;  %v663_v26 = vpop.f32.mrb[35].mxu1  ;;  %1326 = vmatmul.mubr.bf16.gmra.mrb[28].mxu0 %v762_v19  ;;  %v741_v27 = vmax.f32 %v669_v22, 0.0  ;;  %p1505_p7 = por %p1504_p6, %p1503_p5 }
 0x23f   :  { %v664_v0 = vadd.f32 %v1703_v3, %v663_v26  ;;  %v739_v28 = vmax.f32 %v661_v24, 0.0 }
 0x240   :  { %v742_v29 = vmax.f32 %v672_v38, 0.0  ;;  %p1506_p8 = pnand %p1505_p7, %p1499_p4 }
 0x241   :  { %v740_v30 = vmax.f32 %v664_v0, 0.0 }
 0x242   :  { %v764_v31 = vpack.c.bf16 %v742_v29, %v741_v27 }
 0x243   :  { %v763_v32 = vpack.c.bf16 %v740_v30, %v739_v28  ;;  %v1287_v33 = vpop.f32.mrb[36].mxu1 }
 0x244   :  { %v685_v34 = vadd.f32 %v1287_v33, %v1703_v3  ;;  %v676_v35 = vpop.f32.mrb[37].mxu1 }
 0x245   :  { %v677_v36 = vadd.f32 %v1703_v3, %v676_v35  ;;  %v1288_v37 = vpop.f32.mrb[38].mxu1  ;;  %1329 = vmatprep.mubr.bf16.mxu0 %v763_v32 }
 0x246   :  { %v688_v39 = vadd.f32 %v1288_v37, %v1703_v3  ;;  %v679_v40 = vpop.f32.mrb[39].mxu1  ;;  %1330 = vmatmul.mubr.bf16.gmra.mrb[32].mxu0 %v764_v31  ;;  %v745_v42 = vmax.f32 %v685_v34, 0.0 }
 0x247   :  { %v680_v41 = vadd.f32 %v1703_v3, %v679_v40  ;;  %v743_v44 = vmax.f32 %v677_v36, 0.0 }
 0x248   :  { %v746_v43 = vmax.f32 %v688_v39, 0.0 }
 0x249   :  { %v744_v45 = vmax.f32 %v680_v41, 0.0 }
 0x24a   :  { %v766_v46 = vpack.c.bf16 %v746_v43, %v745_v42 }
 0x24b   :  { %v765_v47 = vpack.c.bf16 %v744_v45, %v743_v44  ;;  %v1291_v48 = vpop.f32.mrb[40].mxu1 }
 0x24c   :  { %v701_v49 = vadd.f32 %v1291_v48, %v1703_v3  ;;  %v692_v50 = vpop.f32.mrb[41].mxu1 }
 0x24d   :  { %v693_v51 = vadd.f32 %v1703_v3, %v692_v50  ;;  %v1292_v52 = vpop.f32.mrb[42].mxu1  ;;  %1333 = vmatprep.mubr.bf16.mxu0 %v765_v47 }
 0x24e   :  { %v704_v53 = vadd.f32 %v1292_v52, %v1703_v3  ;;  %v695_v54 = vpop.f32.mrb[43].mxu1  ;;  %1334 = vmatmul.mubr.bf16.gmra.mrb[36].mxu0 %v766_v46  ;;  %v749_v56 = vmax.f32 %v701_v49, 0.0 }
 0x24f   :  { %v696_v55 = vadd.f32 %v1703_v3, %v695_v54  ;;  %v747_v58 = vmax.f32 %v693_v51, 0.0 }
 0x250   :  { %v750_v57 = vmax.f32 %v704_v53, 0.0 }
 0x251   :  { %v748_v59 = vmax.f32 %v696_v55, 0.0 }
 0x252   :  { %v768_v60 = vpack.c.bf16 %v750_v57, %v749_v56 }
 0x253   :  { %v767_v61 = vpack.c.bf16 %v748_v59, %v747_v58  ;;  %v1295_v62 = vpop.f32.mrb[44].mxu1 }
 0x254   :  { %v717_v63 = vadd.f32 %v1295_v62, %v1703_v3  ;;  %v708_v1 = vpop.f32.mrb[45].mxu1 }
 0x255   :  { %v709_v2 = vadd.f32 %v1703_v3, %v708_v1  ;;  %v1296_v4 = vpop.f32.mrb[46].mxu1  ;;  %1337 = vmatprep.mubr.bf16.mxu0 %v767_v61 }
 0x256   :  { %v720_v5 = vadd.f32 %v1296_v4, %v1703_v3  ;;  %v711_v6 = vpop.f32.mrb[47].mxu1  ;;  %1338 = vmatmul.mubr.bf16.gmra.mrb[40].mxu0 %v768_v60  ;;  %v753_v8 = vmax.f32 %v717_v63, 0.0 }
 0x257   :  { %v712_v7 = vadd.f32 %v1703_v3, %v711_v6  ;;  %v751_v10 = vmax.f32 %v709_v2, 0.0 }
 0x258   :  { %v754_v9 = vmax.f32 %v720_v5, 0.0 }
 0x259   :  { %v752_v11 = vmax.f32 %v712_v7, 0.0 }
 0x25a   :  { %v770_v12 = vpack.c.bf16 %v754_v9, %v753_v8 }
 0x25b   :  { %v769_v13 = vpack.c.bf16 %v752_v11, %v751_v10 }
 0x25d   :  { %1341 = vmatprep.mubr.bf16.mxu0 %v769_v13 }
 0x25e   :  { %1342 = vmatmul.mubr.bf16.gmra.mrb[44].mxu0 %v770_v12 }
 0x2f9   :  { %v1315_v15 = vpop.f32.mrb[16].mxu0 }
 0x2fa   :  { %v885_v16 = vadd.f32 %v1315_v15, %v1740_v14  ;;  %v876_v17 = vpop.f32.mrb[17].mxu0 }
 0x2fb   :  { %v877_v18 = vadd.f32 %v1740_v14, %v876_v17  ;;  %v1316_v3 = vpop.f32.mrb[18].mxu0 }
 0x2fc   :  { %v1005_v19 = vmax.f32 %v885_v16, 0.0  ;;  %v888_v20 = vadd.f32 %v1316_v3, %v1740_v14  ;;  %v879_v21 = vpop.f32.mrb[19].mxu0 }
 0x2fd   :  { %v1003_v22 = vmax.f32 %v877_v18, 0.0  ;;  %v880_v23 = vadd.f32 %v1740_v14, %v879_v21 }
 0x2fe   :  { %1037 = vst [vmem:[#allocation10 + $0x10] sm:$0xff] %v1005_v19  ;;  %v1006_v24 = vmax.f32 %v888_v20, 0.0 }
 0x2ff   :  { %1035 = vst [vmem:[#allocation10] sm:$0xff] %v1003_v22  ;;  %v1004_v25 = vmax.f32 %v880_v23, 0.0 }
 0x300   :  { %1038 = vst [vmem:[#allocation10 + $0x18] sm:$0xff] %v1006_v24 }
 0x301   :  { %1036 = vst [vmem:[#allocation10 + $0x8] sm:$0xff] %v1004_v25  ;;  %v1319_v38 = vpop.f32.mrb[20].mxu0 }
 0x302   :  { %v901_v26 = vadd.f32 %v1319_v38, %v1740_v14  ;;  %v892_v0 = vpop.f32.mrb[21].mxu0 }
 0x303   :  { %v893_v27 = vadd.f32 %v1740_v14, %v892_v0  ;;  %v1320_v29 = vpop.f32.mrb[22].mxu0 }
 0x304   :  { %v1009_v28 = vmax.f32 %v901_v26, 0.0  ;;  %v904_v30 = vadd.f32 %v1320_v29, %v1740_v14  ;;  %v895_v31 = vpop.f32.mrb[23].mxu0 }
 0x305   :  { %v1007_v32 = vmax.f32 %v893_v27, 0.0  ;;  %v896_v33 = vadd.f32 %v1740_v14, %v895_v31 }
 0x306   :  { %1041 = vst [vmem:[#allocation10 + $0x30] sm:$0xff] %v1009_v28  ;;  %v1010_v34 = vmax.f32 %v904_v30, 0.0 }
 0x307   :  { %1039 = vst [vmem:[#allocation10 + $0x20] sm:$0xff] %v1007_v32  ;;  %v1008_v35 = vmax.f32 %v896_v33, 0.0 }
 0x308   :  { %1042 = vst [vmem:[#allocation10 + $0x38] sm:$0xff] %v1010_v34 }
 0x309   :  { %1040 = vst [vmem:[#allocation10 + $0x28] sm:$0xff] %v1008_v35  ;;  %v1323_v36 = vpop.f32.mrb[24].mxu0 }
 0x30a   :  { %v917_v37 = vadd.f32 %v1323_v36, %v1740_v14  ;;  %v908_v39 = vpop.f32.mrb[25].mxu0 }
 0x30b   :  { %v909_v40 = vadd.f32 %v1740_v14, %v908_v39  ;;  %v1324_v41 = vpop.f32.mrb[26].mxu0 }
 0x30c   :  { %v1013_v42 = vmax.f32 %v917_v37, 0.0  ;;  %v920_v43 = vadd.f32 %v1324_v41, %v1740_v14  ;;  %v911_v44 = vpop.f32.mrb[27].mxu0 }
 0x30d   :  { %v1011_v45 = vmax.f32 %v909_v40, 0.0  ;;  %v912_v46 = vadd.f32 %v1740_v14, %v911_v44 }
 0x30e   :  { %1045 = vst [vmem:[#allocation10 + $0x50] sm:$0xff] %v1013_v42  ;;  %v1014_v47 = vmax.f32 %v920_v43, 0.0 }
 0x30f   :  { %1043 = vst [vmem:[#allocation10 + $0x40] sm:$0xff] %v1011_v45  ;;  %v1012_v48 = vmax.f32 %v912_v46, 0.0 }
 0x310   :  { %1046 = vst [vmem:[#allocation10 + $0x58] sm:$0xff] %v1014_v47 }
 0x311   :  { %1044 = vst [vmem:[#allocation10 + $0x48] sm:$0xff] %v1012_v48  ;;  %v1327_v49 = vpop.f32.mrb[28].mxu0 }
 0x312   :  { %v933_v50 = vadd.f32 %v1327_v49, %v1740_v14  ;;  %v924_v51 = vpop.f32.mrb[29].mxu0 }
 0x313   :  { %v925_v52 = vadd.f32 %v1740_v14, %v924_v51  ;;  %v1328_v53 = vpop.f32.mrb[30].mxu0 }
 0x314   :  { %v1017_v54 = vmax.f32 %v933_v50, 0.0  ;;  %v936_v55 = vadd.f32 %v1328_v53, %v1740_v14  ;;  %v927_v56 = vpop.f32.mrb[31].mxu0 }
 0x315   :  { %v1015_v57 = vmax.f32 %v925_v52, 0.0  ;;  %v928_v58 = vadd.f32 %v1740_v14, %v927_v56 }
 0x316   :  { %1049 = vst [vmem:[#allocation10 + $0x70] sm:$0xff] %v1017_v54  ;;  %v1018_v59 = vmax.f32 %v936_v55, 0.0 }
 0x317   :  { %1047 = vst [vmem:[#allocation10 + $0x60] sm:$0xff] %v1015_v57  ;;  %v1016_v60 = vmax.f32 %v928_v58, 0.0 }
 0x318   :  { %1050 = vst [vmem:[#allocation10 + $0x78] sm:$0xff] %v1018_v59 }
 0x319   :  { %1048 = vst [vmem:[#allocation10 + $0x68] sm:$0xff] %v1016_v60  ;;  %v1331_v61 = vpop.f32.mrb[32].mxu0 }
 0x31a   :  { %v949_v62 = vadd.f32 %v1331_v61, %v1740_v14  ;;  %v940_v63 = vpop.f32.mrb[33].mxu0 }
 0x31b   :  { %v941_v1 = vadd.f32 %v1740_v14, %v940_v63  ;;  %v1332_v2 = vpop.f32.mrb[34].mxu0 }
 0x31c   :  { %v1021_v4 = vmax.f32 %v949_v62, 0.0  ;;  %v952_v5 = vadd.f32 %v1332_v2, %v1740_v14  ;;  %v943_v6 = vpop.f32.mrb[35].mxu0 }
 0x31d   :  { %v1019_v7 = vmax.f32 %v941_v1, 0.0  ;;  %v944_v8 = vadd.f32 %v1740_v14, %v943_v6 }
 0x31e   :  { %1053 = vst [vmem:[#allocation10 + $0x90] sm:$0xff] %v1021_v4  ;;  %v1022_v9 = vmax.f32 %v952_v5, 0.0 }
 0x31f   :  { %1051 = vst [vmem:[#allocation10 + $0x80] sm:$0xff] %v1019_v7  ;;  %v1020_v10 = vmax.f32 %v944_v8, 0.0 }
 0x320   :  { %1054 = vst [vmem:[#allocation10 + $0x98] sm:$0xff] %v1022_v9 }
 0x321   :  { %1052 = vst [vmem:[#allocation10 + $0x88] sm:$0xff] %v1020_v10  ;;  %v1335_v11 = vpop.f32.mrb[36].mxu0 }
 0x322   :  { %v965_v12 = vadd.f32 %v1335_v11, %v1740_v14  ;;  %v956_v13 = vpop.f32.mrb[37].mxu0 }
 0x323   :  { %v957_v15 = vadd.f32 %v1740_v14, %v956_v13  ;;  %v1336_v16 = vpop.f32.mrb[38].mxu0 }
 0x324   :  { %v1025_v17 = vmax.f32 %v965_v12, 0.0  ;;  %v968_v18 = vadd.f32 %v1336_v16, %v1740_v14  ;;  %v959_v3 = vpop.f32.mrb[39].mxu0 }
 0x325   :  { %v1023_v19 = vmax.f32 %v957_v15, 0.0  ;;  %v960_v20 = vadd.f32 %v1740_v14, %v959_v3 }
 0x326   :  { %1057 = vst [vmem:[#allocation10 + $0xb0] sm:$0xff] %v1025_v17  ;;  %v1026_v21 = vmax.f32 %v968_v18, 0.0 }
 0x327   :  { %1055 = vst [vmem:[#allocation10 + $0xa0] sm:$0xff] %v1023_v19  ;;  %v1024_v22 = vmax.f32 %v960_v20, 0.0 }
 0x328   :  { %1058 = vst [vmem:[#allocation10 + $0xb8] sm:$0xff] %v1026_v21 }
 0x329   :  { %1056 = vst [vmem:[#allocation10 + $0xa8] sm:$0xff] %v1024_v22  ;;  %v1339_v23 = vpop.f32.mrb[40].mxu0 }
 0x32a   :  { %v981_v24 = vadd.f32 %v1339_v23, %v1740_v14  ;;  %v972_v25 = vpop.f32.mrb[41].mxu0 }
 0x32b   :  { %v973_v38 = vadd.f32 %v1740_v14, %v972_v25  ;;  %v1340_v26 = vpop.f32.mrb[42].mxu0 }
 0x32c   :  { %v1029_v0 = vmax.f32 %v981_v24, 0.0  ;;  %v984_v27 = vadd.f32 %v1340_v26, %v1740_v14  ;;  %v975_v29 = vpop.f32.mrb[43].mxu0 }
 0x32d   :  { %v1027_v28 = vmax.f32 %v973_v38, 0.0  ;;  %v976_v30 = vadd.f32 %v1740_v14, %v975_v29 }
 0x32e   :  { %1061 = vst [vmem:[#allocation10 + $0xd0] sm:$0xff] %v1029_v0  ;;  %v1030_v31 = vmax.f32 %v984_v27, 0.0 }
 0x32f   :  { %1059 = vst [vmem:[#allocation10 + $0xc0] sm:$0xff] %v1027_v28  ;;  %v1028_v32 = vmax.f32 %v976_v30, 0.0 }
 0x330   :  { %1062 = vst [vmem:[#allocation10 + $0xd8] sm:$0xff] %v1030_v31 }
 0x331   :  { %1060 = vst [vmem:[#allocation10 + $0xc8] sm:$0xff] %v1028_v32  ;;  %v1343_v33 = vpop.f32.mrb[44].mxu0 }
 0x332   :  { %v997_v34 = vadd.f32 %v1343_v33, %v1740_v14  ;;  %v988_v35 = vpop.f32.mrb[45].mxu0 }
 0x333   :  { %v989_v36 = vadd.f32 %v1740_v14, %v988_v35  ;;  %v1344_v37 = vpop.f32.mrb[46].mxu0 }
 0x334   :  { %v1033_v39 = vmax.f32 %v997_v34, 0.0  ;;  %v1000_v40 = vadd.f32 %v1344_v37, %v1740_v14  ;;  %v991_v41 = vpop.f32.mrb[47].mxu0 }
 0x335   :  { %v1031_v42 = vmax.f32 %v989_v36, 0.0  ;;  %v992_v43 = vadd.f32 %v1740_v14, %v991_v41 }
 0x336   :  { %1065 = vst [vmem:[#allocation10 + $0xf0] sm:$0xff] %v1033_v39  ;;  %v1034_v44 = vmax.f32 %v1000_v40, 0.0 }
 0x337   :  { %1063 = vst [vmem:[#allocation10 + $0xe0] sm:$0xff] %v1031_v42  ;;  %v1032_v45 = vmax.f32 %v992_v43, 0.0 }
 0x338   :  { %1066 = vst [vmem:[#allocation10 + $0xf8] sm:$0xff] %v1034_v44 }
 0x339   :  { %1064 = vst [vmem:[#allocation10 + $0xe8] sm:$0xff] %v1032_v45 }
 0x33a   :  { %1509 = shalt.err (!%p1506_p8)
}
 0x33b   :  { %s1510_s9 = scalar_lea.hbm %s1793_s7, 4096 }
 0x33c   :  { %p1511_p9 = scmp.ne.s32.totalorder %s1793_s7, %s1510_s9  ;;  %p1514_p10 = scmp.lt.u32.totalorder %s1510_s9, %s1793_s7 }
 0x33e   :  { %p1516_p11 = pnand %p1514_p10, %p1511_p9 }
 0x340   :  { %1519 = shalt.err (!%p1516_p11)
}
 0x341   :  { %s1535_s16 = smov 128   ;;  %s1536_s0 = smov 8  }
 0x342   :  { %1078 = dma.vmem_to_hbm [thread:$0]  %s1073_s28, 4096, %s1793_s7, [#allocation4], %s1535_s16, %s1535_s16, %s1536_s0  }
 0x343   :  { %1526 = dma.done.wait [#allocation4], 4096  }
 0x344   :  { %1527 = vsyncadd [#allocation4], 4294963200 }
 0x345   :  { %1082 = vsyncpa [#allocation3], 1 }
 0x346   :  { %1083 = vsyncpa [#allocation6], 1 }
 0x347   :  { %1084 = vsyncpa [#allocation9], 1 }
 0x348   :  { %1085 = vsyncpa [#allocation4], 1 }

</bundles_post_ra>
